<compile_context>
chip_gen: v7x
topology: tpu7x:2x2x1
jax: 0.10.0
libtpu: 0.0.40
codegen_flags: <defaults>
</compile_context>

<pallas_src>
import math
from typing import NamedTuple, Optional

import jax
import jax.numpy as jnp
from jax import lax
from jax.experimental import pallas as pl
from jax.experimental.pallas import tpu as pltpu

_MIB = 1024 * 1024


def _cdiv(a, b):
    return (a + b - 1) // b


def _round_up(x, m):
    return _cdiv(x, m) * m


def _fit_tile(dim, max_tile, granule):
    """Largest tile <= max_tile (multiple of `granule`) with near-uniform grid steps.

    Returns (tile, padded_dim) with padded_dim = num_steps * tile >= dim; this minimizes
    padding compared to blindly rounding `dim` up to a multiple of `max_tile`.
    """
    dp = _round_up(dim, granule)
    steps = _cdiv(dp, max_tile)
    tile = _round_up(_cdiv(dp, steps), granule)
    return tile, steps * tile


class _TileConfig(NamedTuple):
    tm: int
    tn: int
    tk: int
    vmem_cap: int   # ceiling handed to vmem_limit_bytes
    num_cores: int  # TensorCores that can share the "parallel" grid axes


def _tile_config() -> _TileConfig:
    """Generation-aware tile / VMEM defaults (see header comment for the roofline math)."""
    try:
        kind = jax.devices()[0].device_kind.lower()
    except Exception:  # pragma: no cover
        kind = ""
    if "v7" in kind:
        # 64 MiB VMEM per TC, ~3.2 TB/s HBM, 2 TCs per chip.
        return _TileConfig(tm=768, tn=768, tk=1024, vmem_cap=48 * _MIB, num_cores=2)
    if "v6" in kind:
        # 128 MiB VMEM, ~1.4 TB/s HBM -> needs 1024-class output tiles to be MXU-bound.
        return _TileConfig(tm=1024, tn=1024, tk=1024, vmem_cap=100 * _MIB, num_cores=1)
    if "v5" in kind and ("lite" in kind or "v5e" in kind):
        # 4x128^2 MXU: 512x512 already MXU-bound; 128-multiple alignment suffices.
        return _TileConfig(tm=512, tn=512, tk=1024, vmem_cap=100 * _MIB, num_cores=1)
    # v5p / v4 / unknown: moderate tiles, conservative VMEM ceiling.
    return _TileConfig(tm=512, tn=512, tk=1024, vmem_cap=48 * _MIB, num_cores=1)


def _make_linear_kernel(have_bias, precision):
    """x_ref:(tm,tk) activations, w_ref:(tk,tn) pre-transposed weight -> plain matmul."""

    def kernel(x_ref, w_ref, *rest):
        if have_bias:
            b_ref, o_ref, acc_ref = rest
        else:
            o_ref, acc_ref = rest

        @pl.when(pl.program_id(2) == 0)
        def _():
            acc_ref[...] = jnp.zeros_like(acc_ref)

        # Cast the activation tile on-chip (VMEM) -> no extra HBM pass in the wrapper.
        x_tile = x_ref[...].astype(w_ref.dtype)
        acc_ref[...] += jnp.dot(x_tile, w_ref[...],
                                precision=precision,
                                preferred_element_type=jnp.float32)

        @pl.when(pl.program_id(2) == pl.num_programs(2) - 1)
        def _():
            acc = acc_ref[...]
            if have_bias:
                acc = acc + b_ref[...].astype(jnp.float32)
            o_ref[...] = acc.astype(o_ref.dtype)

    return kernel


class LinearParams(NamedTuple):
    w_t: jax.Array             # (Kp, Np): weight pre-transposed to (in, out), compute dtype
    bias: Optional[jax.Array]  # (1, Np) float32, or None
    in_features: int
    out_features: int


def prepare_linear_params(weight, bias=None, *, compute_dtype=jnp.bfloat16):
    """One-time parameter preparation (do this at init, NOT per forward call).

    * transpose to (in, out) so the kernel contracts (tm,tk)x(tk,tn) with no transpose
      on the MXU path,
    * cast to `compute_dtype` (bf16 by default; pass jnp.float32 plus
      precision=lax.Precision.HIGHEST to linear_forward for fp32 parity),
    * pad both dims to multiples of 128 so the forward pass normally does zero per-call
      padding of the weight.
    """
    out_features, in_features = weight.shape
    w_t = weight.T.astype(compute_dtype)
    kp = _round_up(in_features, 128)
    np_ = _round_up(out_features, 128)
    if (kp, np_) != (in_features, out_features):
        w_t = jnp.pad(w_t, ((0, kp - in_features), (0, np_ - out_features)))
    b2d = None
    if bias is not None:
        b2d = bias.reshape(1, out_features).astype(jnp.float32)
        if np_ != out_features:
            b2d = jnp.pad(b2d, ((0, 0), (0, np_ - out_features)))
    return LinearParams(w_t, b2d, in_features, out_features)


def linear_forward(x, params: LinearParams, *, precision=None):
    """y = x @ W.T + b (torch.nn.Linear semantics) using pre-prepared parameters.

    x: (..., in_features); output: (..., out_features) in x.dtype.
    """
    K, N = params.in_features, params.out_features
    lead_shape = x.shape[:-1]
    x2d = x.reshape(-1, K)
    M = x2d.shape[0]
    out_dtype = x.dtype
    compute_dtype = params.w_t.dtype

    cfg = _tile_config()
    tm_e, Mp = _fit_tile(M, cfg.tm, 8)
    tn_e, Np = _fit_tile(N, cfg.tn, 128)
    tk_e, Kp = _fit_tile(K, cfg.tk, 128)
    grid_m, grid_n, grid_k = Mp // tm_e, Np // tn_e, Kp // tk_e

    # v7x: both TensorCores only get work if a "parallel" axis has >= 2 blocks.
    if cfg.num_cores >= 2 and grid_m * grid_n == 1 and (M * N) >= (1 << 18):
        if Mp >= 16:
            tm_e, Mp = _fit_tile(M, max(8, _round_up(_cdiv(Mp, 2), 8)), 8)
        elif Np >= 256:
            tn_e, Np = _fit_tile(N, max(128, _round_up(_cdiv(Np, 2), 128)), 128)
        grid_m, grid_n = Mp // tm_e, Np // tn_e

    grid = (grid_m, grid_n, grid_k)

    # Activations: pre-cast in the wrapper only when each x tile is re-read enough times
    # (grid_n >= 4) to amortize the extra HBM pass; otherwise cast inside the kernel.
    x_c = x2d
    if x_c.dtype != compute_dtype and grid_n >= 4:
        x_c = x_c.astype(compute_dtype)
    if (Mp, Kp) != (M, K):
        # TODO(synk): ragged-M could use a cdiv grid + masked epilogue store instead of
        # materializing a padded copy of x; padding is a no-op for aligned shapes.
        x_c = jnp.pad(x_c, ((0, Mp - M), (0, Kp - K)))

    # Weight / bias were padded to 128-multiples at prepare time; only pad further for
    # unusual K/N where the chosen tile does not divide that padded extent (rare, small).
    w_c = params.w_t
    if w_c.shape != (Kp, Np):
        w_c = jnp.pad(w_c, ((0, Kp - w_c.shape[0]), (0, Np - w_c.shape[1])))
    have_bias = params.bias is not None
    if have_bias:
        b_c = params.bias
        if b_c.shape[1] != Np:
            b_c = jnp.pad(b_c, ((0, 0), (0, Np - b_c.shape[1])))

    # GEMV-like / HBM-bound shapes: 3-deep input pipelining hides tile-boundary DMA.
    spec_kwargs = {}
    if Mp <= 256 and grid_k >= 3:
        spec_kwargs = dict(pipeline_mode=pl.Buffered(3))
    x_spec = pl.BlockSpec((tm_e, tk_e), lambda i, j, k: (i, k), **spec_kwargs)
    w_spec = pl.BlockSpec((tk_e, tn_e), lambda i, j, k: (k, j), **spec_kwargs)
    o_spec = pl.BlockSpec((tm_e, tn_e), lambda i, j, k: (i, j))

    kernel = _make_linear_kernel(have_bias, precision)
    if have_bias:
        in_specs = [x_spec, w_spec, pl.BlockSpec((1, tn_e), lambda i, j, k: (0, j))]
        operands = (x_c, w_c, b_c)
    else:
        in_specs = [x_spec, w_spec]
        operands = (x_c, w_c)

    # VMEM budget: pipelined input/output buffers + f32 accumulator. Never below the
    # real requirement; ceiling is generation-aware (v7x only has 64 MiB physical VMEM).
    n_in_bufs = 3 if spec_kwargs else 2
    xb = jnp.dtype(x_c.dtype).itemsize
    wb = jnp.dtype(w_c.dtype).itemsize
    ob = jnp.dtype(out_dtype).itemsize
    vmem_needed = (n_in_bufs * tm_e * tk_e * xb
                   + n_in_bufs * tk_e * tn_e * wb
                   + 2 * tm_e * tn_e * ob
                   + tm_e * tn_e * 4
                   + (2 * tn_e * 4 if have_bias else 0))
    vmem_limit = int(min(cfg.vmem_cap, max(16 * _MIB, vmem_needed + 8 * _MIB)))

    cost = pl.CostEstimate(
        flops=2 * M * K * N,
        transcendentals=0,
        bytes_accessed=(M * K * xb + K * N * wb
                        + (N * 4 if have_bias else 0) + M * N * ob),
    )

    out = pl.pallas_call(
        kernel,
        out_shape=jax.ShapeDtypeStruct((Mp, Np), out_dtype),
        grid_spec=pltpu.PrefetchScalarGridSpec(
            num_scalar_prefetch=0,
            grid=grid,
            in_specs=in_specs,
            out_specs=o_spec,
            scratch_shapes=[pltpu.VMEM((tm_e, tn_e), jnp.float32)],
        ),
        compiler_params=pltpu.CompilerParams(
            dimension_semantics=("parallel", "parallel", "arbitrary"),
            vmem_limit_bytes=vmem_limit,
        ),
        cost_estimate=cost,
    )(*operands)

    if (Mp, Np) != (M, N):
        out = out[:M, :N]
    return out.reshape(*lead_shape, N)


def init_linear_params(key, in_channels, out_channels, bias=True):
    """Deterministic init matching the module: xavier_normal_ weight, zero bias."""
    std = math.sqrt(2.0 / (in_channels + out_channels))  # xavier normal, gain=1
    w = jax.random.normal(key, (out_channels, in_channels), dtype=jnp.float32) * std
    b = jnp.zeros((out_channels,), dtype=jnp.float32) if bias else None
    return w, b


if __name__ == "__main__":
    key = jax.random.PRNGKey(0)
    k_x, k_w = jax.random.split(key)

    batch, seq, in_channels, out_channels = 2, 8, 32, 64
    x = jax.random.normal(k_x, (batch, seq, in_channels), dtype=jnp.float32)
    weight, bias = init_linear_params(k_w, in_channels, out_channels, bias=True)

    # One-time parameter preparation (cast + transpose + pad) -- not per call.
    params = prepare_linear_params(weight, bias)
    y = jax.block_until_ready(linear_forward(x, params))

    # Correctness check against plain JAX reference (bf16 MXU inputs -> loose tolerance).
    y_ref = x @ weight.T + bias
    assert y.shape == (batch, seq, out_channels)
    assert jnp.allclose(y, y_ref, atol=3e-2, rtol=3e-2), float(jnp.max(jnp.abs(y - y_ref)))

    # Also exercise the bias=None path.
    params_nb = prepare_linear_params(weight, None)
    y_nb = jax.block_until_ready(linear_forward(x, params_nb))
    assert jnp.allclose(y_nb, x @ weight.T, atol=3e-2, rtol=3e-2)

    print("KERNEL_OK")
</pallas_src>

<mosaic_0001>
module attributes {stable_mosaic.version = 11 : i64} {
  func.func @kernel(%arg0: i32, %arg1: i32, %arg2: i32, %arg3: memref<16x128xf32, #tpu.memory_space<vmem>>, %arg4: memref<128x128xbf16, #tpu.memory_space<vmem>>, %arg5: memref<1x128xf32, #tpu.memory_space<vmem>>, %arg6: memref<16x128xf32, #tpu.memory_space<vmem>>, %arg7: memref<16x128xf32, #tpu.memory_space<vmem>>) attributes {dimension_semantics = [#tpu.dimension_semantics<parallel>, #tpu.dimension_semantics<parallel>, #tpu.dimension_semantics<arbitrary>], iteration_bounds = array<i64: 1, 1, 1>, scalar_prefetch = 0 : i64, scratch_operands = 1 : i64, tpu.core_type = #tpu.core_type<tc>, window_params = [{transform_indices = @transform_0, window_bounds = array<i64: 16, 128>}, {transform_indices = @transform_1, window_bounds = array<i64: 128, 128>}, {transform_indices = @transform_2, window_bounds = array<i64: 1, 128>}, {transform_indices = @transform_3, window_bounds = array<i64: 16, 128>}]} {
    %c0_i32 = arith.constant 0 : i32
    %0 = arith.cmpi eq, %arg2, %c0_i32 : i32
    %1 = arith.extui %0 : i1 to i32
    %c0_i32_0 = arith.constant 0 : i32
    %2 = arith.cmpi ne, %1, %c0_i32_0 : i32
    scf.if %2 {
      %cst_10 = arith.constant 0.000000e+00 : f32
      %13 = vector.broadcast %cst_10 : f32 to vector<16x128xf32>
      %c0_11 = arith.constant 0 : index
      %c0_12 = arith.constant 0 : index
      %14 = vector.load %arg7[%c0_11, %c0_12] : memref<16x128xf32, #tpu.memory_space<vmem>>, vector<16x128xf32>
      tpu.vector_store %arg7[%c0_11, %c0_12], %13 {strides = array<i32>} : memref<16x128xf32, #tpu.memory_space<vmem>>, vector<16x128xf32>,
    } else {
    }
    %c0 = arith.constant 0 : index
    %c0_1 = arith.constant 0 : index
    %3 = vector.load %arg3[%c0, %c0_1] : memref<16x128xf32, #tpu.memory_space<vmem>>, vector<16x128xf32>
    %4 = arith.truncf %3 : vector<16x128xf32> to vector<16x128xbf16>
    %c0_2 = arith.constant 0 : index
    %c0_3 = arith.constant 0 : index
    %5 = vector.load %arg7[%c0_2, %c0_3] : memref<16x128xf32, #tpu.memory_space<vmem>>, vector<16x128xf32>
    %c0_4 = arith.constant 0 : index
    %c0_5 = arith.constant 0 : index
    %6 = vector.load %arg4[%c0_4, %c0_5] : memref<128x128xbf16, #tpu.memory_space<vmem>>, vector<128x128xbf16>
    %cst = arith.constant dense<0.000000e+00> : vector<16x128xf32>
    %7 = tpu.matmul %4, %6, %cst {dimension_numbers = #tpu.dot_dimension_numbers<[1], [0], [0], [1], [0, 0, 1, 1], [], []>} : vector<16x128xbf16>, vector<128x128xbf16>, vector<16x128xf32> -> vector<16x128xf32>
    %8 = arith.addf %5, %7 : vector<16x128xf32>
    %c0_6 = arith.constant 0 : index
    %c0_7 = arith.constant 0 : index
    %9 = vector.load %arg7[%c0_6, %c0_7] : memref<16x128xf32, #tpu.memory_space<vmem>>, vector<16x128xf32>
    tpu.vector_store %arg7[%c0_6, %c0_7], %8 {strides = array<i32>} : memref<16x128xf32, #tpu.memory_space<vmem>>, vector<16x128xf32>,
    %c0_i32_8 = arith.constant 0 : i32
    %10 = arith.cmpi eq, %arg2, %c0_i32_8 : i32
    %11 = arith.extui %10 : i1 to i32
    %c0_i32_9 = arith.constant 0 : i32
    %12 = arith.cmpi ne, %11, %c0_i32_9 : i32
    scf.if %12 {
      %c0_10 = arith.constant 0 : index
      %c0_11 = arith.constant 0 : index
      %13 = vector.load %arg7[%c0_10, %c0_11] : memref<16x128xf32, #tpu.memory_space<vmem>>, vector<16x128xf32>
      %c0_12 = arith.constant 0 : index
      %c0_13 = arith.constant 0 : index
      %14 = vector.load %arg5[%c0_12, %c0_13] : memref<1x128xf32, #tpu.memory_space<vmem>>, vector<1x128xf32>
      %15 = vector.broadcast %14 : vector<1x128xf32> to vector<16x128xf32>
      %16 = arith.addf %13, %15 : vector<16x128xf32>
      %c0_14 = arith.constant 0 : index
      %c0_15 = arith.constant 0 : index
      %17 = vector.load %arg6[%c0_14, %c0_15] : memref<16x128xf32, #tpu.memory_space<vmem>>, vector<16x128xf32>
      tpu.vector_store %arg6[%c0_14, %c0_15], %16 {strides = array<i32>} : memref<16x128xf32, #tpu.memory_space<vmem>>, vector<16x128xf32>,
    } else {
    }
    return
  }
  func.func @transform_0(%arg0: i32, %arg1: i32, %arg2: i32) -> (i32, i32) {
    %c0_i32 = arith.constant 0 : i32
    return %arg0, %arg2 : i32, i32
  }
  func.func @transform_1(%arg0: i32, %arg1: i32, %arg2: i32) -> (i32, i32) {
    %c0_i32 = arith.constant 0 : i32
    return %arg2, %arg1 : i32, i32
  }
  func.func @transform_2(%arg0: i32, %arg1: i32, %arg2: i32) -> (i32, i32) {
    %c0_i32 = arith.constant 0 : i32
    %c0_i32_0 = arith.constant 0 : i32
    return %c0_i32, %arg1 : i32, i32
  }
  func.func @transform_3(%arg0: i32, %arg1: i32, %arg2: i32) -> (i32, i32) {
    %c0_i32 = arith.constant 0 : i32
    return %arg0, %arg1 : i32, i32
  }
}

</mosaic_0001>

<bundles_post_ra>
// kernel: tpu_custom_call.1
= control target key start
LH: loop header
LB: loop body
LE: loop exit
PB: predicated region body
PF: predicated region fallthrough
CT: control target
= control target key end

     0   :  { %8 = vsyncpa [#allocation4], 0  ;;  %s399_s0 = inlined_call_operand.hbm [shape: f32[16,128], index: 0, kind: input, shape index: {}]   ;;  %s400_s1 = inlined_call_operand.hbm [shape: bf16[128,128], index: 1, kind: input, shape index: {}]   ;;  %s401_s2 = inlined_call_operand.vmem [shape: f32[1,128], index: 2, kind: input, shape index: {}]   ;;  %s402_s3 = inlined_call_operand.hbm [shape: f32[16,128], index: 3, kind: output, shape index: {}]  }
   0x1   :  { %9 = vsyncpa [#allocation7], 0 }
   0x2   :  { %10 = vsyncpa [#allocation5], 0  ;;  %s325_s12 = smov [#allocation3]   ;;  %s253_s16 = scalar_lea.hbm %s399_s0, 256 }
   0x3   :  { %s16_s13 = sshll.u32 %s325_s12, 4  ;;  %p254_p0 = scmp.ne.s32.totalorder %s399_s0, %s253_s16  ;;  %s17_s13 = int_to_ptr.vmem [resolvable:$true] %s16_s13 }
   0x4   :  { %p257_p1 = scmp.lt.u32.totalorder %s253_s16, %s399_s0 }
   0x6   :  { %p259_p2 = pnand %p257_p1, %p254_p0 }
   0x8   :  { %262 = shalt.err (!%p259_p2)
}
   0x9   :  { %s263_s21 = scalar_lea.vmem %s17_s13, 256  ;;  %p268_p4 = scmp.lt.s32.totalorder %s17_s13, %s17_s13 }
   0xa   :  { %p264_p3 = scmp.ne.s32.totalorder %s17_s13, %s263_s21  ;;  %p269_p5 = scmp.lt.s32.totalorder %s263_s21, %s263_s21 }
   0xc   :  { %p270_p6 = por %p269_p5, %p268_p4 }
   0xe   :  { %p271_p7 = pnand %p270_p6, %p264_p3 }
  0x10   :  { %274 = shalt.err (!%p271_p7)
}
  0x11   :  { %s326_s22 = smov 128   ;;  %s327_s23 = smov 8  }
  0x12   :  { %22 = dma.hbm_to_vmem [thread:$0]  %s399_s0, 256, %s17_s13, [#allocation4], %s326_s22, %s326_s22, %s327_s23  }
  0x13   :  { %s328_s26 = smov [#allocation6]   ;;  %s275_s30 = scalar_lea.hbm %s400_s1, 1024 }
  0x14   :  { %s28_s27 = sshll.u32 %s328_s26, 4  ;;  %p276_p8 = scmp.ne.s32.totalorder %s400_s1, %s275_s30  ;;  %s29_s27 = int_to_ptr.vmem [resolvable:$true] %s28_s27 }
  0x15   :  { %p279_p9 = scmp.lt.u32.totalorder %s275_s30, %s400_s1 }
  0x17   :  { %p281_p10 = pnand %p279_p9, %p276_p8 }
  0x19   :  { %284 = shalt.err (!%p281_p10)
}
  0x1a   :  { %s285_s8 = scalar_lea.vmem %s29_s27, 1024  ;;  %p290_p12 = scmp.lt.s32.totalorder %s29_s27, %s29_s27 }
  0x1b   :  { %p286_p11 = scmp.ne.s32.totalorder %s29_s27, %s285_s8  ;;  %p291_p13 = scmp.lt.s32.totalorder %s285_s8, %s285_s8 }
  0x1d   :  { %p292_p0 = por %p291_p13, %p290_p12 }
  0x1f   :  { %p293_p1 = pnand %p292_p0, %p286_p11 }
  0x21   :  { %296 = shalt.err (!%p293_p1)
}
  0x22   :  { %s329_s0 = smov 64   ;;  %s330_s9 = smov 4  }
  0x23   :  { %34 = dma.hbm_to_vmem [thread:$0]  %s400_s1, 1024, %s29_s27, [#allocation7], %s329_s0, %s329_s0, %s330_s9  }
  0x24   :  { %319 = dma.done.wait [#allocation4], 256  }
  0x25   :  { %320 = vsyncadd [#allocation4], 4294967040 }
  0x26   :  { %321 = dma.done.wait [#allocation7], 1024  }
  0x27   :  { %322 = vsyncadd [#allocation7], 4294966272  ;;  %v331_v0 = vmov 0.0   ;;  %vm332_vm0 = vmmov 0   ;;  %v245_v1 = vld [vmem:[#allocation6] sm:$0xff]   ;;  %v246_v2 = vld [vmem:[#allocation6 + $0x8] sm:$0xff]  }
  0x28   :  { %216 = vmatprep.subr.bf16.mxu0 %v331_v0  ;;  %232 = vmatprep.mubr.msk.bf16.mxu0 %vm332_vm0, %v331_v0  ;;  %v247_v3 = vld [vmem:[#allocation6 + $0x10] sm:$0xff]   ;;  %v248_v4 = vld [vmem:[#allocation6 + $0x18] sm:$0xff]   ;;  %v249_v5 = vld [vmem:[#allocation6 + $0x20] sm:$0xff]   ;;  %s333_s13 = smov [#allocation8]  }
  0x29   :  { %217 = vmatpush3.bf16.msra.mxu0 %v245_v1  ;;  %v250_v6 = vld [vmem:[#allocation6 + $0x28] sm:$0xff]   ;;  %v251_v7 = vld [vmem:[#allocation6 + $0x30] sm:$0xff]   ;;  %v252_v8 = vld [vmem:[#allocation6 + $0x38] sm:$0xff]   ;;  %s185_s14 = sshll.u32 %s333_s13, 4  ;;  %s186_s14 = int_to_ptr.vmem [resolvable:$true] %s185_s14 }
  0x2a   :  { %218 = vmatprep.subr.bf16.mxu0 %v331_v0  ;;  %v50_v9 = vld [vmem:[#allocation3] sm:$0xff]  ;;  %v51_v10 = vld [vmem:[#allocation3 + $0x8] sm:$0xff]  ;;  %s297_s15 = scalar_lea.vmem %s186_s14, 256  ;;  %p302_p3 = scmp.lt.s32.totalorder %s186_s14, %s186_s14 }
  0x2b   :  { %v52_v11 = vpack.c.bf16 %v51_v10, %v50_v9  ;;  %v206_v12 = vld [vmem:[%s401_s2] ss:$0 sm:$0xff]  ;;  %p298_p2 = scmp.ne.s32.totalorder %s186_s14, %s297_s15  ;;  %p303_p4 = scmp.lt.s32.totalorder %s297_s15, %s297_s15 }
  0x2d   :  { %219 = vmatpush3.bf16.msra.mxu0 %v246_v2  ;;  %p304_p5 = por %p303_p4, %p302_p3 }
  0x2e   :  { %220 = vmatprep.subr.bf16.mxu0 %v331_v0 }
  0x2f   :  { %p305_p6 = pnand %p304_p5, %p298_p2 }
  0x31   :  { %221 = vmatpush3.bf16.msra.mxu0 %v247_v3 }
  0x32   :  { %222 = vmatprep.subr.bf16.mxu0 %v331_v0 }
  0x35   :  { %223 = vmatpush3.bf16.msra.mxu0 %v248_v4 }
  0x36   :  { %224 = vmatprep.subr.bf16.mxu0 %v331_v0 }
  0x39   :  { %225 = vmatpush3.bf16.msra.mxu0 %v249_v5 }
  0x3a   :  { %226 = vmatprep.subr.bf16.mxu0 %v331_v0 }
  0x3d   :  { %227 = vmatpush3.bf16.msra.mxu0 %v250_v6 }
  0x3e   :  { %228 = vmatprep.subr.bf16.mxu0 %v331_v0 }
  0x41   :  { %229 = vmatpush3.bf16.msra.mxu0 %v251_v7 }
  0x42   :  { %230 = vmatprep.subr.bf16.mxu0 %v331_v0 }
  0x45   :  { %231 = vmatpush3.bf16.msra.mxu0 %v252_v8 }
  0x48   :  { %233 = vmatmul.mubr.bf16.vlgmr.msra.gmra.mrb[0].mxu0 %v52_v11 }
 0x11b   :  { %v153_v13 = vpop.f32.mrb[0].mxu0 }
 0x11c   :  { %v176_v14 = vadd.f32 %v206_v12, %v153_v13  ;;  %v234_v15 = vpop.f32.mrb[1].mxu0 }
 0x11d   :  { %v156_v16 = vpop.f32.mrb[2].mxu0 }
 0x11e   :  { %178 = vst [vmem:[#allocation8] sm:$0xff] %v176_v14  ;;  %v177_v17 = vadd.f32 %v206_v12, %v156_v16  ;;  %v235_v18 = vpop.f32.mrb[3].mxu0 }
 0x120   :  { %179 = vst [vmem:[#allocation8 + $0x8] sm:$0xff] %v177_v17 }
 0x121   :  { %308 = shalt.err (!%p305_p6)
}
 0x122   :  { %s309_s17 = scalar_lea.hbm %s402_s3, 256 }
 0x123   :  { %p310_p7 = scmp.ne.s32.totalorder %s402_s3, %s309_s17  ;;  %p313_p8 = scmp.lt.u32.totalorder %s309_s17, %s402_s3 }
 0x125   :  { %p315_p9 = pnand %p313_p8, %p310_p7 }
 0x127   :  { %318 = shalt.err (!%p315_p9)
}
 0x128   :  { %191 = dma.vmem_to_hbm [thread:$0]  %s186_s14, 256, %s402_s3, [#allocation5], %s326_s22, %s326_s22, %s327_s23  }
 0x129   :  { %323 = dma.done.wait [#allocation5], 256  }
 0x12a   :  { %324 = vsyncadd [#allocation5], 4294967040 }
 0x12b   :  { %195 = vsyncpa [#allocation4], 1 }
 0x12c   :  { %196 = vsyncpa [#allocation7], 1 }
 0x12d   :  { %197 = vsyncpa [#allocation5], 1 }

</bundles_post_ra>
